<compile_context>
chip_gen: v7x
topology: tpu7x:2x2x1
jax: 0.10.0
libtpu: 0.0.40
codegen_flags: <defaults>
</compile_context>

<pallas_src>
import jax
import jax.numpy as jnp
import numpy as np
from jax.experimental import pallas as pl
from jax.experimental.pallas import tpu as pltpu

# ---- problem sizes (small, consistent with the module) ----
L = 8        # target sequence length
S = 8        # source sequence length
N = 2        # batch
E = 32       # embed_dim
K = 16       # kdim = vdim
NUM_HEADS = 4
HEAD_DIM = E // NUM_HEADS
LN_EPS = 1e-5
NL = N * L
NS = N * S
NEG_INF = -1e30
assert NL == NS  # lane-packing of [x | k | bias] into one slab relies on equal row counts

# ---- packed-operand layout constants ----
SLAB_W = 128                              # lane width of both operands and the output
B_OFF = E + K                             # 48: additive-bias lanes in the activation slab
ONE_OFF = E + K + NS                      # 64: constant-1 column (folds in-proj biases)
OUT_W = SLAB_W                            # lane-dense padded output width

ROW_W_IN = 0                              # (128,128) fused in-projection weight (rows = act lanes)
ROW_HMASK = SLAB_W                        # 128: (H*NL, E) static block-diagonal head mask
ROW_WOF = ROW_HMASK + NUM_HEADS * NL      # 192: (E, *) rows holding [Wo^T | Wf^T]
ROW_VEC = ROW_WOF + E                     # 224: rows bo, gamma, beta, bf
P_ROWS = ROW_VEC + 8                      # 232 (multiple of 8)


def _co_attention_kernel(act_ref, p_ref, out_ref):
    a = act_ref[...]                                     # (NL, 128) packed activations

    # ---- fused Q/K/V in-projection (+ biases via the constant-1 column) ----
    w_in = p_ref[ROW_W_IN:ROW_W_IN + SLAB_W, :]          # (128, 128)
    proj = jnp.dot(a, w_in, preferred_element_type=jnp.float32)   # (NL, 128)
    qp = proj[:, 0:E]                                    # (NL, E)  already * scale + bq
    kp = proj[:, E:2 * E]                                # (NL, E)
    vp = proj[:, 2 * E:3 * E]                            # (NL, E)

    x = a[:, 0:E]                                        # original q rows (residuals)
    bias = a[:, B_OFF:B_OFF + NS]                        # (NL, NS) additive mask bias

    # ---- static parameters (one slab, sliced views / values) ----
    hm = p_ref[ROW_HMASK:ROW_HMASK + NUM_HEADS * NL, 0:E]    # (H*NL, E) head mask
    wof = p_ref[ROW_WOF:ROW_WOF + E, :]                  # (E, 128) = [Wo^T | Wf^T | 0]
    w_o = wof[:, 0:E]
    w_f = wof[:, E:2 * E]
    vecs = p_ref[ROW_VEC:ROW_VEC + 8, :]                 # (8, 128): bo/gamma/beta/bf rows
    b_o = vecs[0:1, 0:E]
    gamma = vecs[1:2, 0:E]
    beta = vecs[2:3, 0:E]
    b_f = vecs[3:4, 0:E]

    # ---- block-diagonal attention: all batches AND heads in two matmuls ----
    q_stack = jnp.concatenate([qp] * NUM_HEADS, axis=0) * hm          # (H*NL, E)
    scores = jax.lax.dot_general(q_stack, kp, (((1,), (1,)), ((), ())),
                                 preferred_element_type=jnp.float32)  # (H*NL, NS)
    scores = scores + jnp.concatenate([bias] * NUM_HEADS, axis=0)     # mask BEFORE max-sub

    m = jnp.max(scores, axis=-1, keepdims=True)
    pexp = jnp.exp(scores - m)                           # masked / cross-batch -> exactly 0
    attn = pexp * pl.reciprocal(jnp.sum(pexp, axis=-1, keepdims=True), approx=True)

    raw = jnp.dot(attn, vp, preferred_element_type=jnp.float32) * hm  # (H*NL, E)
    ctx = raw[0:NL, :]
    for h in range(1, NUM_HEADS):
        ctx = ctx + raw[h * NL:(h + 1) * NL, :]                       # (NL, E) head-concat

    # ---- output projection + residual + LayerNorm + FFN residual ----
    resid = x + jnp.dot(ctx, w_o, preferred_element_type=jnp.float32) + b_o
    mean = jnp.mean(resid, axis=-1, keepdims=True)
    cen = resid - mean
    var = jnp.mean(cen * cen, axis=-1, keepdims=True)
    ln = cen * jax.lax.rsqrt(var + LN_EPS) * gamma + beta
    out32 = jnp.dot(ln, w_f, preferred_element_type=jnp.float32) + b_f + resid

    # lane-dense (NL, 128) store: result in lanes 0:E, zeros elsewhere
    out_ref[...] = jnp.concatenate(
        [out32, jnp.zeros((NL, OUT_W - E), jnp.float32)], axis=-1).astype(out_ref.dtype)


def _pack_params(params):
    """One-time packing of the 12 raw parameter tensors into a single (P_ROWS, 128) slab."""
    scale = float(HEAD_DIM) ** -0.5   # folded into Wq/bq so the kernel never rescales

    # fused in-projection weight; rows correspond 1:1 to the activation-slab lanes.
    w_in = jnp.zeros((SLAB_W, SLAB_W), jnp.float32)
    w_in = w_in.at[0:E, 0:E].set(params['wq_t'] * scale)
    w_in = w_in.at[E:E + K, E:2 * E].set(params['wk_t'])
    w_in = w_in.at[E:E + K, 2 * E:3 * E].set(params['wv_t'])
    w_in = w_in.at[ONE_OFF, 0:E].set(params['bq'][0] * scale)
    w_in = w_in.at[ONE_OFF, E:2 * E].set(params['bk'][0])
    w_in = w_in.at[ONE_OFF, 2 * E:3 * E].set(params['bv'][0])

    # static block-diagonal head mask: stacked-row head block == lane head block
    head = jnp.arange(NUM_HEADS * NL) // NL
    lane = jnp.arange(E) // HEAD_DIM
    head_mask = (head[:, None] == lane[None, :]).astype(jnp.float32)  # (H*NL, E)

    p = jnp.zeros((P_ROWS, SLAB_W), jnp.float32)
    p = p.at[ROW_W_IN:ROW_W_IN + SLAB_W, :].set(w_in)
    p = p.at[ROW_HMASK:ROW_HMASK + NUM_HEADS * NL, 0:E].set(head_mask)
    p = p.at[ROW_WOF:ROW_WOF + E, 0:E].set(params['wo_t'])
    p = p.at[ROW_WOF:ROW_WOF + E, E:2 * E].set(params['wf_t'])
    p = p.at[ROW_VEC + 0, 0:E].set(params['bo'][0])
    p = p.at[ROW_VEC + 1, 0:E].set(params['gamma'][0])
    p = p.at[ROW_VEC + 2, 0:E].set(params['beta'][0])
    p = p.at[ROW_VEC + 3, 0:E].set(params['bf'][0])
    return p


@jax.jit
def co_attention_forward(packed, inputs):
    q = inputs['q']                     # (L, N, E)
    k = inputs['k']                     # (S, N, K)
    kpm = inputs['key_padding_mask']    # (N, S) bool
    amask = inputs['attn_mask']         # (L, S) float32

    x_flat = jnp.transpose(q, (1, 0, 2)).reshape(NL, E).astype(jnp.float32)     # (N*L, E)
    k_flat = jnp.transpose(k, (1, 0, 2)).reshape(NS, K).astype(jnp.float32)     # (N*S, K)

    # combined additive bias: attn_mask + key-padding within each batch block,
    # NEG_INF on cross-batch blocks (makes the batch-collapsed softmax exact).
    kpm_add = jnp.where(kpm, jnp.float32(NEG_INF), jnp.float32(0.0)).reshape(1, NS)
    same_batch = (jnp.arange(NL) // L)[:, None] == (jnp.arange(NS) // S)[None, :]
    bias = jnp.where(same_batch,
                     jnp.tile(amask.astype(jnp.float32), (N, N)) + kpm_add,
                     jnp.float32(NEG_INF))                                      # (NL, NS)

    # ONE lane-dense activation slab: [x | k | bias | 1 | 0-pad]
    act = jnp.concatenate(
        [x_flat, k_flat, bias,
         jnp.ones((NL, 1), jnp.float32),
         jnp.zeros((NL, SLAB_W - ONE_OFF - 1), jnp.float32)], axis=-1)          # (NL, 128)

    full2 = lambda i: (0, 0)
    grid_spec = pltpu.PrefetchScalarGridSpec(
        num_scalar_prefetch=0,
        grid=(1,),                                     # single fused invocation
        in_specs=[
            pl.BlockSpec((NL, SLAB_W), full2),         # packed activations
            pl.BlockSpec((P_ROWS, SLAB_W), full2),     # packed parameters
        ],
        out_specs=pl.BlockSpec((NL, OUT_W), full2),    # lane-dense padded output
    )

    out_padded = pl.pallas_call(
        _co_attention_kernel,
        out_shape=jax.ShapeDtypeStruct((NL, OUT_W), jnp.float32),
        grid_spec=grid_spec,
        compiler_params=pltpu.CompilerParams(dimension_semantics=("arbitrary",)),
    )(act, packed)

    updated_q = jnp.transpose(out_padded[:, 0:E].reshape(N, L, E), (1, 0, 2))   # (L, N, E)
    return {'q': updated_q, 'k': k, 'key_padding_mask': kpm, 'attn_mask': amask}


def _reference_forward(params, inputs):
    """Pure-JAX reference replicating PyTorch nn.MultiheadAttention semantics."""
    q = inputs['q'].astype(jnp.float32)            # (L, N, E)
    k = inputs['k'].astype(jnp.float32)            # (S, N, K)
    kpm = inputs['key_padding_mask']               # (N, S)
    amask = inputs['attn_mask']                    # (L, S)

    qb = jnp.transpose(q, (1, 0, 2))               # (N, L, E)
    kb = jnp.transpose(k, (1, 0, 2))               # (N, S, K)
    qp = qb @ params['wq_t'] + params['bq']
    kp = kb @ params['wk_t'] + params['bk']
    vp = kb @ params['wv_t'] + params['bv']
    qp = qp.reshape(N, L, NUM_HEADS, HEAD_DIM) * (HEAD_DIM ** -0.5)
    kp = kp.reshape(N, S, NUM_HEADS, HEAD_DIM)
    vp = vp.reshape(N, S, NUM_HEADS, HEAD_DIM)
    scores = jnp.einsum('nlhd,nshd->nhls', qp, kp) + amask[None, None]
    scores = jnp.where(kpm[:, None, None, :], NEG_INF, scores)
    attn = jax.nn.softmax(scores, axis=-1)
    ctx = jnp.einsum('nhls,nshd->nlhd', attn, vp).reshape(N, L, E)
    q_with_attn = ctx @ params['wo_t'] + params['bo']
    resid = qb + q_with_attn
    mean = resid.mean(-1, keepdims=True)
    var = ((resid - mean) ** 2).mean(-1, keepdims=True)
    ln = (resid - mean) * jax.lax.rsqrt(var + LN_EPS) * params['gamma'] + params['beta']
    out = ln @ params['wf_t'] + params['bf'] + resid
    return jnp.transpose(out, (1, 0, 2))           # (L, N, E)


def _init_params(key):
    ks = jax.random.split(key, 12)
    scale = 0.05
    mk = lambda i, shape: (scale * jax.random.normal(ks[i], shape)).astype(jnp.float32)
    return {
        # stored pre-transposed: (in_features, out_features)
        'wq_t': mk(0, (E, E)), 'bq': mk(1, (1, E)),
        'wk_t': mk(2, (K, E)), 'bk': mk(3, (1, E)),
        'wv_t': mk(4, (K, E)), 'bv': mk(5, (1, E)),
        'wo_t': mk(6, (E, E)), 'bo': mk(7, (1, E)),
        'gamma': jnp.ones((1, E), jnp.float32),
        'beta': jnp.zeros((1, E), jnp.float32),
        'wf_t': mk(8, (E, E)), 'bf': mk(9, (1, E)),
    }


if __name__ == "__main__":
    root = jax.random.PRNGKey(0)
    k_params, k_q, k_k, k_m = jax.random.split(root, 4)

    params = _init_params(k_params)
    packed = _pack_params(params)          # one-time packing: 12 tensors -> 1 operand

    q_in = jax.random.normal(k_q, (L, N, E), jnp.float32)
    k_in = jax.random.normal(k_k, (S, N, K), jnp.float32)
    # pad the last source position of every batch element
    key_padding_mask = jnp.zeros((N, S), jnp.bool_).at[:, -1].set(True)
    attn_mask = (0.1 * jax.random.normal(k_m, (L, S))).astype(jnp.float32)

    inputs = {'q': q_in, 'k': k_in,
              'key_padding_mask': key_padding_mask, 'attn_mask': attn_mask}

    out = co_attention_forward(packed, inputs)
    jax.block_until_ready(out['q'])

    ref = _reference_forward(params, inputs)
    # tolerance slightly looser than exact-f32 because the softmax denominator uses the
    # EUP approximate reciprocal (pl.reciprocal(approx=True)); all matmuls remain f32.
    np.testing.assert_allclose(np.asarray(out['q']), np.asarray(ref),
                               rtol=1e-3, atol=1e-3)

    # TODO(synk): attention dropout is a training-time op; forward here is inference (no-op).
    print("KERNEL_OK")
</pallas_src>

<mosaic_0001>
module attributes {stable_mosaic.version = 11 : i64} {
  func.func @_co_attention_kernel(%arg0: i32, %arg1: memref<16x128xf32, #tpu.memory_space<vmem>>, %arg2: memref<232x128xf32, #tpu.memory_space<vmem>>, %arg3: memref<16x128xf32, #tpu.memory_space<vmem>>) attributes {dimension_semantics = [#tpu.dimension_semantics<arbitrary>], iteration_bounds = array<i64: 1>, scalar_prefetch = 0 : i64, scratch_operands = 0 : i64, tpu.core_type = #tpu.core_type<tc>, window_params = [{pipeline_mode = #tpu.pipeline_mode<synchronous>, transform_indices = @transform_0, window_bounds = array<i64: 16, 128>}, {pipeline_mode = #tpu.pipeline_mode<synchronous>, transform_indices = @transform_1, window_bounds = array<i64: 232, 128>}, {pipeline_mode = #tpu.pipeline_mode<synchronous>, transform_indices = @transform_2, window_bounds = array<i64: 16, 128>}]} {
    %c0 = arith.constant 0 : index
    %c0_0 = arith.constant 0 : index
    %0 = vector.load %arg1[%c0, %c0_0] : memref<16x128xf32, #tpu.memory_space<vmem>>, vector<16x128xf32>
    %c0_1 = arith.constant 0 : index
    %c0_2 = arith.constant 0 : index
    %1 = vector.load %arg2[%c0_1, %c0_2] : memref<232x128xf32, #tpu.memory_space<vmem>>, vector<128x128xf32>
    %cst = arith.constant dense<0.000000e+00> : vector<16x128xf32>
    %2 = tpu.matmul %0, %1, %cst {dimension_numbers = #tpu.dot_dimension_numbers<[1], [0], [0], [1], [0, 0, 1, 1], [], []>} : vector<16x128xf32>, vector<128x128xf32>, vector<16x128xf32> -> vector<16x128xf32>
    %3 = vector.extract_strided_slice %2 {offsets = [0, 0], sizes = [16, 32], strides = [1, 1]} : vector<16x128xf32> to vector<16x32xf32>
    %4 = vector.extract_strided_slice %2 {offsets = [0, 32], sizes = [16, 32], strides = [1, 1]} : vector<16x128xf32> to vector<16x32xf32>
    %5 = vector.extract_strided_slice %2 {offsets = [0, 64], sizes = [16, 32], strides = [1, 1]} : vector<16x128xf32> to vector<16x32xf32>
    %6 = vector.extract_strided_slice %0 {offsets = [0, 0], sizes = [16, 32], strides = [1, 1]} : vector<16x128xf32> to vector<16x32xf32>
    %7 = vector.extract_strided_slice %0 {offsets = [0, 48], sizes = [16, 16], strides = [1, 1]} : vector<16x128xf32> to vector<16x16xf32>
    %c128 = arith.constant 128 : index
    %c0_3 = arith.constant 0 : index
    %8 = vector.load %arg2[%c128, %c0_3] : memref<232x128xf32, #tpu.memory_space<vmem>>, vector<64x32xf32>
    %c192 = arith.constant 192 : index
    %c0_4 = arith.constant 0 : index
    %9 = vector.load %arg2[%c192, %c0_4] : memref<232x128xf32, #tpu.memory_space<vmem>>, vector<32x128xf32>
    %10 = vector.extract_strided_slice %9 {offsets = [0, 0], sizes = [32, 32], strides = [1, 1]} : vector<32x128xf32> to vector<32x32xf32>
    %11 = vector.extract_strided_slice %9 {offsets = [0, 32], sizes = [32, 32], strides = [1, 1]} : vector<32x128xf32> to vector<32x32xf32>
    %c224 = arith.constant 224 : index
    %c0_5 = arith.constant 0 : index
    %12 = vector.load %arg2[%c224, %c0_5] : memref<232x128xf32, #tpu.memory_space<vmem>>, vector<8x128xf32>
    %13 = vector.extract_strided_slice %12 {offsets = [0, 0], sizes = [1, 32], strides = [1, 1]} : vector<8x128xf32> to vector<1x32xf32>
    %14 = vector.extract_strided_slice %12 {offsets = [1, 0], sizes = [1, 32], strides = [1, 1]} : vector<8x128xf32> to vector<1x32xf32>
    %15 = vector.extract_strided_slice %12 {offsets = [2, 0], sizes = [1, 32], strides = [1, 1]} : vector<8x128xf32> to vector<1x32xf32>
    %16 = vector.extract_strided_slice %12 {offsets = [3, 0], sizes = [1, 32], strides = [1, 1]} : vector<8x128xf32> to vector<1x32xf32>
    %17 = tpu.concatenate %3, %3, %3, %3 in 0 : vector<16x32xf32>, vector<16x32xf32>, vector<16x32xf32>, vector<16x32xf32> -> vector<64x32xf32>
    %18 = arith.mulf %17, %8 : vector<64x32xf32>
    %cst_6 = arith.constant dense<0.000000e+00> : vector<64x16xf32>
    %19 = tpu.matmul %18, %4, %cst_6 {dimension_numbers = #tpu.dot_dimension_numbers<[1], [1], [0], [0], [0, 0, 1, 0], [], []>} : vector<64x32xf32>, vector<16x32xf32>, vector<64x16xf32> -> vector<64x16xf32>
    %20 = tpu.concatenate %7, %7, %7, %7 in 0 : vector<16x16xf32>, vector<16x16xf32>, vector<16x16xf32>, vector<16x16xf32> -> vector<64x16xf32>
    %21 = arith.addf %19, %20 : vector<64x16xf32>
    %cst_7 = arith.constant dense<0xFF800000> : vector<64xf32>
    %22 = vector.multi_reduction <maximumf>, %21, %cst_7 [1] : vector<64x16xf32> to vector<64xf32>
    %23 = vector.shape_cast %22 : vector<64xf32> to vector<64x1xf32>
    %24 = vector.broadcast %23 : vector<64x1xf32> to vector<64x16xf32>
    %25 = arith.subf %21, %24 : vector<64x16xf32>
    %26 = math.exp %25 : vector<64x16xf32>
    %cst_8 = arith.constant dense<0.000000e+00> : vector<64xf32>
    %27 = vector.multi_reduction <add>, %26, %cst_8 [1] : vector<64x16xf32> to vector<64xf32>
    %28 = vector.shape_cast %27 : vector<64xf32> to vector<64x1xf32>
    %29 = tpu.reciprocal %28 {approx = true} : vector<64x1xf32> -> vector<64x1xf32>
    %30 = vector.broadcast %29 : vector<64x1xf32> to vector<64x16xf32>
    %31 = arith.mulf %26, %30 : vector<64x16xf32>
    %cst_9 = arith.constant dense<0.000000e+00> : vector<64x32xf32>
    %32 = tpu.matmul %31, %5, %cst_9 {dimension_numbers = #tpu.dot_dimension_numbers<[1], [0], [0], [1], [0, 0, 1, 1], [], []>} : vector<64x16xf32>, vector<16x32xf32>, vector<64x32xf32> -> vector<64x32xf32>
    %33 = arith.mulf %32, %8 : vector<64x32xf32>
    %34 = vector.extract_strided_slice %33 {offsets = [0, 0], sizes = [16, 32], strides = [1, 1]} : vector<64x32xf32> to vector<16x32xf32>
    %35 = vector.extract_strided_slice %33 {offsets = [16, 0], sizes = [16, 32], strides = [1, 1]} : vector<64x32xf32> to vector<16x32xf32>
    %36 = arith.addf %34, %35 : vector<16x32xf32>
    %37 = vector.extract_strided_slice %33 {offsets = [32, 0], sizes = [16, 32], strides = [1, 1]} : vector<64x32xf32> to vector<16x32xf32>
    %38 = arith.addf %36, %37 : vector<16x32xf32>
    %39 = vector.extract_strided_slice %33 {offsets = [48, 0], sizes = [16, 32], strides = [1, 1]} : vector<64x32xf32> to vector<16x32xf32>
    %40 = arith.addf %38, %39 : vector<16x32xf32>
    %cst_10 = arith.constant dense<0.000000e+00> : vector<16x32xf32>
    %41 = tpu.matmul %40, %10, %cst_10 {dimension_numbers = #tpu.dot_dimension_numbers<[1], [0], [0], [1], [0, 0, 1, 1], [], []>} : vector<16x32xf32>, vector<32x32xf32>, vector<16x32xf32> -> vector<16x32xf32>
    %42 = arith.addf %6, %41 : vector<16x32xf32>
    %43 = vector.broadcast %13 : vector<1x32xf32> to vector<16x32xf32>
    %44 = arith.addf %42, %43 : vector<16x32xf32>
    %cst_11 = arith.constant dense<0.000000e+00> : vector<16xf32>
    %45 = vector.multi_reduction <add>, %44, %cst_11 [1] : vector<16x32xf32> to vector<16xf32>
    %46 = vector.shape_cast %45 : vector<16xf32> to vector<16x1xf32>
    %cst_12 = arith.constant 3.200000e+01 : f32
    %47 = vector.broadcast %cst_12 : f32 to vector<16x1xf32>
    %48 = arith.divf %46, %47 : vector<16x1xf32>
    %49 = vector.broadcast %48 : vector<16x1xf32> to vector<16x32xf32>
    %50 = arith.subf %44, %49 : vector<16x32xf32>
    %51 = arith.mulf %50, %50 : vector<16x32xf32>
    %cst_13 = arith.constant dense<0.000000e+00> : vector<16xf32>
    %52 = vector.multi_reduction <add>, %51, %cst_13 [1] : vector<16x32xf32> to vector<16xf32>
    %53 = vector.shape_cast %52 : vector<16xf32> to vector<16x1xf32>
    %cst_14 = arith.constant 3.200000e+01 : f32
    %54 = vector.broadcast %cst_14 : f32 to vector<16x1xf32>
    %55 = arith.divf %53, %54 : vector<16x1xf32>
    %cst_15 = arith.constant 9.99999974E-6 : f32
    %56 = vector.broadcast %cst_15 : f32 to vector<16x1xf32>
    %57 = arith.addf %55, %56 : vector<16x1xf32>
    %58 = math.rsqrt %57 : vector<16x1xf32>
    %59 = vector.broadcast %58 : vector<16x1xf32> to vector<16x32xf32>
    %60 = arith.mulf %50, %59 : vector<16x32xf32>
    %61 = vector.broadcast %14 : vector<1x32xf32> to vector<16x32xf32>
    %62 = arith.mulf %60, %61 : vector<16x32xf32>
    %63 = vector.broadcast %15 : vector<1x32xf32> to vector<16x32xf32>
    %64 = arith.addf %62, %63 : vector<16x32xf32>
    %cst_16 = arith.constant dense<0.000000e+00> : vector<16x32xf32>
    %65 = tpu.matmul %64, %11, %cst_16 {dimension_numbers = #tpu.dot_dimension_numbers<[1], [0], [0], [1], [0, 0, 1, 1], [], []>} : vector<16x32xf32>, vector<32x32xf32>, vector<16x32xf32> -> vector<16x32xf32>
    %66 = vector.broadcast %16 : vector<1x32xf32> to vector<16x32xf32>
    %67 = arith.addf %65, %66 : vector<16x32xf32>
    %68 = arith.addf %67, %44 : vector<16x32xf32>
    %cst_17 = arith.constant 0.000000e+00 : f32
    %69 = vector.broadcast %cst_17 : f32 to vector<16x96xf32>
    %70 = tpu.concatenate %68, %69 in 1 : vector<16x32xf32>, vector<16x96xf32> -> vector<16x128xf32>
    %c0_18 = arith.constant 0 : index
    %c0_19 = arith.constant 0 : index
    %71 = vector.load %arg3[%c0_18, %c0_19] : memref<16x128xf32, #tpu.memory_space<vmem>>, vector<16x128xf32>
    tpu.vector_store %arg3[%c0_18, %c0_19], %70 {strides = array<i32>} : memref<16x128xf32, #tpu.memory_space<vmem>>, vector<16x128xf32>,
    return
  }
  func.func @transform_0(%arg0: i32) -> (i32, i32) {
    %c0_i32 = arith.constant 0 : i32
    %c0_i32_0 = arith.constant 0 : i32
    %c0_i32_1 = arith.constant 0 : i32
    return %c0_i32, %c0_i32_0 : i32, i32
  }
  func.func @transform_1(%arg0: i32) -> (i32, i32) {
    %c0_i32 = arith.constant 0 : i32
    %c0_i32_0 = arith.constant 0 : i32
    %c0_i32_1 = arith.constant 0 : i32
    return %c0_i32, %c0_i32_0 : i32, i32
  }
  func.func @transform_2(%arg0: i32) -> (i32, i32) {
    %c0_i32 = arith.constant 0 : i32
    %c0_i32_0 = arith.constant 0 : i32
    %c0_i32_1 = arith.constant 0 : i32
    return %c0_i32, %c0_i32_0 : i32, i32
  }
}

</mosaic_0001>

<bundles_post_ra>
// kernel: tile.8
= control target key start
LH: loop header
LB: loop body
LE: loop exit
PB: predicated region body
PF: predicated region fallthrough
CT: control target
= control target key end

     0   :  { %s154_s0 = inlined_call_operand.vmem [shape: f32[8,8], index: 0, kind: input, shape index: {}]   ;;  %s155_s1 = inlined_call_operand.vmem [shape: f32[2,8,2,8], index: 1, kind: output, shape index: {}]  }
   0x1   :  { %v4_v0 = vld [vmem:[%s154_s0] ss:$0 sm:$0xff]  ;;  %v51_v1 = vld [vmem:[%s154_s0 + $0x1] ss:$0 sm:$0xff]  ;;  %v54_v2 = vld [vmem:[%s154_s0 + $0x2] ss:$0 sm:$0xff] }
   0x2   :  { %5 = vst [vmem:[%s155_s1] sm:$0x3] %v4_v0  ;;  %50 = vst [vmem:[%s155_s1 + $0x10] sm:$0x3] %v4_v0  ;;  %v57_v3 = vld [vmem:[%s154_s0 + $0x3] ss:$0 sm:$0xff] }
   0x3   :  { %52 = vst [vmem:[%s155_s1 + $0x2] sm:$0x3] %v51_v1  ;;  %53 = vst [vmem:[%s155_s1 + $0x12] sm:$0x3] %v51_v1  ;;  %v60_v4 = vld [vmem:[%s154_s0 + $0x4] ss:$0 sm:$0xff] }
   0x4   :  { %55 = vst [vmem:[%s155_s1 + $0x4] sm:$0x3] %v54_v2  ;;  %56 = vst [vmem:[%s155_s1 + $0x14] sm:$0x3] %v54_v2  ;;  %v63_v5 = vld [vmem:[%s154_s0 + $0x5] ss:$0 sm:$0xff] }
   0x5   :  { %58 = vst [vmem:[%s155_s1 + $0x6] sm:$0x3] %v57_v3  ;;  %59 = vst [vmem:[%s155_s1 + $0x16] sm:$0x3] %v57_v3  ;;  %v66_v6 = vld [vmem:[%s154_s0 + $0x6] ss:$0 sm:$0xff] }
   0x6   :  { %61 = vst [vmem:[%s155_s1 + $0x8] sm:$0x3] %v60_v4  ;;  %62 = vst [vmem:[%s155_s1 + $0x18] sm:$0x3] %v60_v4  ;;  %v69_v7 = vld [vmem:[%s154_s0 + $0x7] ss:$0 sm:$0xff] }
   0x7   :  { %64 = vst [vmem:[%s155_s1 + $0xa] sm:$0x3] %v63_v5  ;;  %65 = vst [vmem:[%s155_s1 + $0x1a] sm:$0x3] %v63_v5 }
   0x8   :  { %67 = vst [vmem:[%s155_s1 + $0xc] sm:$0x3] %v66_v6  ;;  %68 = vst [vmem:[%s155_s1 + $0x1c] sm:$0x3] %v66_v6 }
   0x9   :  { %70 = vst [vmem:[%s155_s1 + $0xe] sm:$0x3] %v69_v7  ;;  %71 = vst [vmem:[%s155_s1 + $0x1e] sm:$0x3] %v69_v7 }

// kernel: tile.9
= control target key start
LH: loop header
LB: loop body
LE: loop exit
PB: predicated region body
PF: predicated region fallthrough
CT: control target
= control target key end

     0   :  { %vm82_vm0 = vcmask 1047556   ;;  %vm84_vm1 = vcmask 64512   ;;  %vm103_vm2 = vcmask 130112   ;;  %s225_s0 = inlined_call_operand.vmem [shape: f32[2,8,2,8], index: 0, kind: input, shape index: {}]   ;;  %s226_s1 = inlined_call_operand.vmem [shape: f32[16,16], index: 1, kind: output, shape index: {}]  }
   0x1   :  { %v138_v0 = vld [vmem:[%s225_s0 + $0xe] sm:$0x3]  ;;  %v139_v1 = vld [vmem:[%s225_s0 + $0xc] sm:$0x3]  ;;  %v140_v2 = vld [vmem:[%s225_s0 + $0xa] sm:$0x3] }
   0x2   :  { %48 = vst [vmem:[#allocation0 + $0x38] sm:$0x3] %v138_v0  ;;  %53 = vst [vmem:[#allocation0 + $0x30] sm:$0x3] %v139_v1  ;;  %v141_v3 = vld [vmem:[%s225_s0 + $0x8] sm:$0x3] }
   0x3   :  { %58 = vst [vmem:[#allocation0 + $0x28] sm:$0x3] %v140_v2  ;;  %v142_v4 = vld [vmem:[%s225_s0 + $0x6] sm:$0x3]  ;;  %v143_v5 = vld [vmem:[%s225_s0 + $0x4] sm:$0x3] }
   0x4   :  { %63 = vst [vmem:[#allocation0 + $0x20] sm:$0x3] %v141_v3  ;;  %68 = vst [vmem:[#allocation0 + $0x18] sm:$0x3] %v142_v4  ;;  %v144_v6 = vld [vmem:[%s225_s0 + $0x2] sm:$0x3] }
   0x5   :  { %73 = vst [vmem:[#allocation0 + $0x10] sm:$0x3] %v143_v5  ;;  %v78_v7 = vld [vmem:[%s225_s0] sm:$0x3]  ;;  %77 = vst [vmem:[#allocation0 + $0x8] sm:$0x3] %v144_v6 }
   0x6   :  { %79 = vst [vmem:[#allocation0] sm:$0x3] %v78_v7  ;;  %v130_v8 = vld [vmem:[%s225_s0 + $0x1e] sm:$0x3]  ;;  %v131_v9 = vld [vmem:[%s225_s0 + $0x1c] sm:$0x3] }
   0x7   :  { %v132_v10 = vld [vmem:[%s225_s0 + $0x1a] sm:$0x3]  ;;  %8 = vst [vmem:[#allocation0 + $0x78] sm:$0x3] %v130_v8  ;;  %13 = vst [vmem:[#allocation0 + $0x70] sm:$0x3] %v131_v9 }
   0x8   :  { %18 = vst [vmem:[#allocation0 + $0x68] sm:$0x3] %v132_v10  ;;  %v133_v11 = vld [vmem:[%s225_s0 + $0x18] sm:$0x3]  ;;  %v134_v12 = vld [vmem:[%s225_s0 + $0x16] sm:$0x3] }
   0x9   :  { %v135_v13 = vld [vmem:[%s225_s0 + $0x14] sm:$0x3]  ;;  %23 = vst [vmem:[#allocation0 + $0x60] sm:$0x3] %v133_v11  ;;  %28 = vst [vmem:[#allocation0 + $0x58] sm:$0x3] %v134_v12 }
   0xa   :  { %33 = vst [vmem:[#allocation0 + $0x50] sm:$0x3] %v135_v13  ;;  %v136_v14 = vld [vmem:[%s225_s0 + $0x12] sm:$0x3]  ;;  %v137_v15 = vld [vmem:[%s225_s0 + $0x10] sm:$0x3] }
   0xb   :  { %38 = vst [vmem:[#allocation0 + $0x48] sm:$0x3] %v136_v14  ;;  %43 = vst [vmem:[#allocation0 + $0x40] sm:$0x3] %v137_v15  ;;  %s148_s0 = smov 8  }
   0xc   :  { %v98_v16 = vld [vmem:[#allocation0 + $0x1] ss:$8 sm:$0xf0]   ;;  %v81_v17 = vld [vmem:[#allocation0] ss:$8 sm:$0xf0]  }
   0xd   :  { %v96_v18 = vld [vmem:[#allocation0 + $0x1] ss:$8 sm:$0xf]   ;;  %v80_v19 = vld [vmem:[#allocation0] ss:$8 sm:$0xf]  }
   0xe   :  { %v100_v20 = vsel %vm82_vm0, %v98_v16, %v96_v18  ;;  %v83_v21 = vsel %vm82_vm0, %v81_v17, %v80_v19 }
   0xf   :  { %101 = vrot.lane.b32.xlu0 %v100_v20, %s148_s0  ;;  %85 = vst.msk [vmem:[%s226_s1] sm:$0xff] %vm84_vm1, %v83_v21  }
  0x10   :  { %v108_v22 = vld [vmem:[#allocation0 + $0x41] ss:$8 sm:$0xf0]   ;;  %v89_v23 = vld [vmem:[#allocation0 + $0x40] ss:$8 sm:$0xf0]  }
  0x12   :  { %v106_v24 = vld [vmem:[#allocation0 + $0x41] ss:$8 sm:$0xf]   ;;  %v87_v25 = vld [vmem:[#allocation0 + $0x40] ss:$8 sm:$0xf]  }
  0x13   :  { %v110_v26 = vsel %vm82_vm0, %v108_v22, %v106_v24  ;;  %v91_v27 = vsel %vm82_vm0, %v89_v23, %v87_v25 }
  0x14   :  { %145 = vst.msk [vmem:[%s226_s1 + $0x8] sm:$0xff] %vm84_vm1, %v91_v27   ;;  %111 = vrot.lane.b32.xlu0 %v110_v26, %s148_s0 }
  0x81   :  { %v102_v28 = vpop.permute.xlu0 %101  }
  0x82   :  { %104 = vst.msk [vmem:[%s226_s1] sm:$0xff] %vm103_vm2, %v102_v28  }
  0x86   :  { %v112_v29 = vpop.permute.xlu0 %111  }
  0x87   :  { %146 = vst.msk [vmem:[%s226_s1 + $0x8] sm:$0xff] %vm103_vm2, %v112_v29  }

// kernel: co_attention_forward.1
= control target key start
LH: loop header
LB: loop body
LE: loop exit
PB: predicated region body
PF: predicated region fallthrough
CT: control target
= control target key end

     0   :  { %vm139_vm0 = vcmask 261120   ;;  %s1028_s19 = smov 96   ;;  %vm273_vm2 = vcmask 130048   ;;  %s1030_s6 = smov 64   ;;  %s1263_s1 = inlined_call_operand.vmem [shape: f32[232,128], index: 1, kind: input, shape index: {}]   ;;  %s1264_s0 = inlined_call_operand.vmem [shape: f32[16,128], index: 0, kind: input, shape index: {}]   ;;  %s1265_s2 = inlined_call_operand.vmem [shape: f32[16,128], index: 2, kind: output, shape index: {}]  }
   0x1   :  { %v13_v0 = vld [vmem:[%s1263_s1] sm:$0xff]  ;;  %v14_v1 = vld [vmem:[%s1263_s1 + $0x8] sm:$0xff]  ;;  %v15_v2 = vld [vmem:[%s1263_s1 + $0x10] sm:$0xff] }
   0x2   :  { %v911_v3 = vpack.c.bf16 %v14_v1, %v13_v0  ;;  %v16_v4 = vld [vmem:[%s1263_s1 + $0x18] sm:$0xff]  ;;  %v17_v6 = vld [vmem:[%s1263_s1 + $0x20] sm:$0xff]  ;;  %v18_v7 = vld [vmem:[%s1263_s1 + $0x28] sm:$0xff] }
   0x3   :  { %v915_v5 = vpack.c.bf16 %v16_v4, %v15_v2  ;;  %v919_v8 = vpack.c.bf16 %v18_v7, %v17_v6  ;;  %v1067_v9 = vld [vmem:[%s1264_s0] sm:$0xff]  ;;  %v19_v10 = vld [vmem:[%s1263_s1 + $0x30] sm:$0xff]  ;;  %v20_v11 = vld [vmem:[%s1263_s1 + $0x38] sm:$0xff] }
   0x4   :  { %912 = vmatprep.subr.bf16.mxu0 %v911_v3  ;;  %854 = vmatprep.mubr.f32.mxu0 %v1067_v9  ;;  %v923_v12 = vpack.c.bf16 %v20_v11, %v19_v10  ;;  %v21_v13 = vld [vmem:[%s1263_s1 + $0x40] sm:$0xff]  ;;  %v22_v14 = vld [vmem:[%s1263_s1 + $0x48] sm:$0xff]  ;;  %v23_v16 = vld [vmem:[%s1263_s1 + $0x50] sm:$0xff] }
   0x5   :  { %914 = vmatpush3.bf16.msra.mxu0 %v911_v3  ;;  %v927_v15 = vpack.c.bf16 %v22_v14, %v21_v13  ;;  %v24_v17 = vld [vmem:[%s1263_s1 + $0x58] sm:$0xff]  ;;  %v25_v19 = vld [vmem:[%s1263_s1 + $0x60] sm:$0xff]  ;;  %v26_v20 = vld [vmem:[%s1263_s1 + $0x68] sm:$0xff] }
   0x6   :  { %916 = vmatprep.subr.bf16.mxu0 %v915_v5  ;;  %v931_v18 = vpack.c.bf16 %v24_v17, %v23_v16  ;;  %v935_v21 = vpack.c.bf16 %v26_v20, %v25_v19  ;;  %v27_v22 = vld [vmem:[%s1263_s1 + $0x70] sm:$0xff]  ;;  %v28_v23 = vld [vmem:[%s1263_s1 + $0x78] sm:$0xff]  ;;  %v1103_v25 = vld [vmem:[%s1264_s0 + $0x8] sm:$0xff]  ;;  %s1029_s0 = smov 80  }
   0x7   :  { %v939_v24 = vpack.c.bf16 %v28_v23, %v27_v22  ;;  %v1109_v26 = vld [vmem:[%s1263_s1 + $0x80] sm:$0xff]  ;;  %135 = vrot.lane.b32.xlu1 %v1103_v25, %s1029_s0  ;;  %vm944_vm1 = vmpackc.low %vm139_vm0, %vm139_vm0  ;;  %v1124_v35 = vld [vmem:[%s1263_s1 + $0x88] sm:$0xff] }
   0x8   :  { %v1129_v36 = vld [vmem:[%s1263_s1 + $0x90] sm:$0xff]  ;;  %v1136_v39 = vld [vmem:[%s1263_s1 + $0x98] sm:$0xff]  ;;  %v1142_v40 = vld [vmem:[%s1263_s1 + $0xa0] sm:$0xff] }
   0x9   :  { %918 = vmatpush3.bf16.msra.mxu0 %v915_v5  ;;  %v1150_v43 = vld [vmem:[%s1263_s1 + $0xa8] sm:$0xff]  ;;  %v1156_v44 = vld [vmem:[%s1263_s1 + $0xb0] sm:$0xff]  ;;  %v1164_v47 = vld [vmem:[%s1263_s1 + $0xb8] sm:$0xff] }
   0xa   :  { %920 = vmatprep.subr.bf16.mxu0 %v919_v8 }
   0xd   :  { %922 = vmatpush3.bf16.msra.mxu0 %v919_v8 }
   0xe   :  { %924 = vmatprep.subr.bf16.mxu0 %v923_v12 }
  0x11   :  { %926 = vmatpush3.bf16.msra.mxu0 %v923_v12 }
  0x12   :  { %928 = vmatprep.subr.bf16.mxu0 %v927_v15 }
  0x15   :  { %930 = vmatpush3.bf16.msra.mxu0 %v927_v15 }
  0x16   :  { %932 = vmatprep.subr.bf16.mxu0 %v931_v18 }
  0x19   :  { %934 = vmatpush3.bf16.msra.mxu0 %v931_v18 }
  0x1a   :  { %936 = vmatprep.subr.bf16.mxu0 %v935_v21 }
  0x1d   :  { %938 = vmatpush3.bf16.msra.mxu0 %v935_v21 }
  0x1e   :  { %940 = vmatprep.subr.bf16.mxu0 %v939_v24 }
  0x21   :  { %942 = vmatpush3.bf16.msra.mxu0 %v939_v24 }
  0x24   :  { %855 = vmatmul.mubr.f32.vlgmr.msra.gmra.mrb[0].mxu0 %v1103_v25 }
  0x79   :  { %v136_v49 = vpop.permute.xlu1 %135 }
  0xf7   :  { %v856_v27 = vpop.f32.mrb[0].mxu0 }
  0xf8   :  { %v95_v28 = vpop.f32.mrb[1].mxu0  ;;  %v118_v37 = vmul.f32 %v856_v27, %v1124_v35  ;;  %v120_v41 = vmul.f32 %v856_v27, %v1136_v39  ;;  %v122_v45 = vmul.f32 %v856_v27, %v1150_v43  ;;  %v124_v48 = vmul.f32 %v856_v27, %v1164_v47 }
  0xf9   :  { %v1111_v29 = vpack.i.bf16 %v856_v27, %v95_v28  ;;  %v117_v30 = vmul.f32 %v1109_v26, %v95_v28  ;;  %v119_v38 = vmul.f32 %v1129_v36, %v95_v28  ;;  %v121_v42 = vmul.f32 %v1142_v40, %v95_v28 }
  0xfa   :  { %v123_v46 = vmul.f32 %v1156_v44, %v95_v28 }
  0xfb   :  { %973 = vrot.lane.b32.xlu0 %v1111_v29, %s1028_s19  ;;  %861 = vmatprep.mubr.msk.f32.mxu1 %vm139_vm0, %v117_v30 }
  0xff   :  { %133 = vrot.lane.b32.xlu0 %v1067_v9, %s1029_s0 }
 0x16d   :  { %v974_v31 = vpop.permute.xlu0 %973 }
 0x16e   :  { %v976_v32 = vunpack.i.h.bf16 %v974_v31  ;;  %v975_v33 = vunpack.i.l.bf16 %v974_v31 }
 0x170   :  { %v943_v34 = vpack.c.bf16 %v976_v32, %v975_v33 }
 0x171   :  { %v134_v50 = vpop.permute.xlu0 %133 }
 0x172   :  { %945 = vmatprep.subr.msk.bf16.mxu1 %vm944_vm1, %v943_v34 }
 0x173   :  { %948 = vmatpush3.bf16.xpose.msk.msra.mxu1 %vm944_vm1, %v943_v34 }
 0x17a   :  { %862 = vmatmul.mubr.msk.f32.vlgmr.msra.gmra.mrb[0].mxu1 %vm139_vm0, %v118_v37 }
 0x17b   :  { %864 = vmatprep.mubr.msk.f32.mxu1 %vm139_vm0, %v119_v38 }
 0x17e   :  { %865 = vmatmul.mubr.msk.f32.gmra.mrb[2].mxu1 %vm139_vm0, %v120_v41 }
 0x17f   :  { %867 = vmatprep.mubr.msk.f32.mxu1 %vm139_vm0, %v121_v42 }
 0x182   :  { %868 = vmatmul.mubr.msk.f32.gmra.mrb[4].mxu1 %vm139_vm0, %v122_v45 }
 0x183   :  { %870 = vmatprep.mubr.msk.f32.mxu1 %vm139_vm0, %v123_v46 }
 0x186   :  { %871 = vmatmul.mubr.msk.f32.gmra.mrb[6].mxu1 %vm139_vm0, %v124_v48 }
 0x24d   :  { %v863_v51 = vpop.f32.mrb[0].mxu1 }
 0x24e   :  { %v240_v52 = vadd.f32 %v863_v51, %v136_v49  ;;  %v234_v53 = vpop.f32.mrb[1].mxu1 }
 0x24f   :  { %v235_v54 = vadd.f32 %v234_v53, %v134_v50 }
 0x250   :  { %v277_v55 = vsel %vm273_vm2, %v240_v52, -inf }
 0x251   :  { %278 = vmax.xlane.f32.xlu0 %v277_v55  ;;  %v866_v56 = vpop.f32.mrb[2].mxu1  ;;  %v274_v57 = vsel %vm273_vm2, %v235_v54, -inf }
 0x252   :  { %v250_v58 = vadd.f32 %v866_v56, %v136_v49  ;;  %v244_v59 = vpop.f32.mrb[3].mxu1  ;;  %275 = vmax.xlane.f32.xlu1 %v274_v57 }
 0x253   :  { %v245_v60 = vadd.f32 %v244_v59, %v134_v50 }
 0x254   :  { %v283_v61 = vsel %vm273_vm2, %v250_v58, -inf }
 0x255   :  { %v869_v62 = vpop.f32.mrb[4].mxu1  ;;  %v280_v63 = vsel %vm273_vm2, %v245_v60, -inf }
 0x256   :  { %v260_v0 = vadd.f32 %v869_v62, %v136_v49  ;;  %v254_v1 = vpop.f32.mrb[5].mxu1  ;;  %281 = vmax.xlane.f32.xlu0 %v280_v63  ;;  %284 = vmax.xlane.f32.xlu1 %v283_v61 }
 0x257   :  { %v255_v2 = vadd.f32 %v254_v1, %v134_v50 }
 0x258   :  { %v289_v3 = vsel %vm273_vm2, %v260_v0, -inf }
 0x259   :  { %v872_v4 = vpop.f32.mrb[6].mxu1  ;;  %v286_v5 = vsel %vm273_vm2, %v255_v2, -inf }
 0x25a   :  { %v270_v6 = vadd.f32 %v872_v4, %v136_v49  ;;  %v264_v7 = vpop.f32.mrb[7].mxu1  ;;  %287 = vmax.xlane.f32.xlu0 %v286_v5  ;;  %290 = vmax.xlane.f32.xlu1 %v289_v3 }
 0x25b   :  { %v265_v8 = vadd.f32 %v264_v7, %v134_v50 }
 0x25c   :  { %v295_v10 = vsel %vm273_vm2, %v270_v6, -inf }
 0x25d   :  { %v292_v11 = vsel %vm273_vm2, %v265_v8, -inf }
 0x25e   :  { %293 = vmax.xlane.f32.xlu0 %v292_v11  ;;  %296 = vmax.xlane.f32.xlu1 %v295_v10 }
 0x2de   :  { %v279_v12 = vpop.xlane.xlu0 %278 }
 0x2df   :  { %v299_v13 = vsub.f32 %v240_v52, %v279_v12  ;;  %v276_v14 = vpop.xlane.xlu1 %275 }
 0x2e0   :  { %v298_v15 = vsub.f32 %v235_v54, %v276_v14 }
 0x2e1   :  { %v308_v16 = vmul.f32 1.442695, %v299_v13 }
 0x2e2   :  { %v306_v17 = vmul.f32 1.442695, %v298_v15 }
 0x2e3   :  { %992 = vpow2.f32 %v308_v16  ;;  %v282_v18 = vpop.xlane.xlu0 %281  ;;  %v285_v19 = vpop.xlane.xlu1 %284 }
 0x2e4   :  { %994 = vpow2.f32 %v306_v17  ;;  %v300_v20 = vsub.f32 %v245_v60, %v282_v18  ;;  %v301_v21 = vsub.f32 %v250_v58, %v285_v19 }
 0x2e6   :  { %v310_v22 = vmul.f32 1.442695, %v300_v20  ;;  %v312_v23 = vmul.f32 1.442695, %v301_v21 }
 0x2e7   :  { %v288_v24 = vpop.xlane.xlu0 %287  ;;  %v291_v27 = vpop.xlane.xlu1 %290 }
 0x2e8   :  { %996 = vpow2.f32 %v310_v22  ;;  %v302_v28 = vsub.f32 %v255_v2, %v288_v24  ;;  %v303_v30 = vsub.f32 %v260_v0, %v291_v27 }
 0x2e9   :  { %998 = vpow2.f32 %v312_v23 }
 0x2ea   :  { %v314_v31 = vmul.f32 1.442695, %v302_v28  ;;  %v316_v32 = vmul.f32 1.442695, %v303_v30  ;;  %v1198_v28 = vld [vmem:[%s1263_s1 + $0xc0] sm:$0xff]  ;;  %v1203_v30 = vld [vmem:[%s1263_s1 + $0xc8] sm:$0xff] }
 0x2eb   :  { %v294_v33 = vpop.xlane.xlu0 %293  ;;  %v297_v34 = vpop.xlane.xlu1 %296 }
 0x2ec   :  { %1000 = vpow2.f32 %v314_v31  ;;  %v304_v37 = vsub.f32 %v265_v8, %v294_v33  ;;  %v305_v38 = vsub.f32 %v270_v6, %v297_v34  ;;  %v953_v31 = vpack.c.bf16 %v1203_v30, %v1198_v28  ;;  %v115_v33 = vld [vmem:[%s1263_s1 + $0xd8] sm:$0xff] }
 0x2ed   :  { %v993_v41 = vpop.eup %992  ;;  %1002 = vpow2.f32 %v316_v32  ;;  %v114_v32 = vld [vmem:[%s1263_s1 + $0xd0] sm:$0xff] }
 0x2ee   :  { %v995_v42 = vpop.eup %994  ;;  %v318_v45 = vmul.f32 1.442695, %v304_v37  ;;  %v320_v46 = vmul.f32 1.442695, %v305_v38  ;;  %v325_v48 = vsel %vm273_vm2, %v993_v41, 0.0  ;;  %954 = vmatprep.subr.bf16.mxu0 %v953_v31  ;;  %v957_v34 = vpack.c.bf16 %v115_v33, %v114_v32 }
 0x2ef   :  { %326 = vadd.xlane.f32.xlu1 %v325_v48  ;;  %v322_v49 = vsel %vm273_vm2, %v995_v42, 0.0  ;;  %956 = vmatpush3.bf16.msra.mxu0 %v953_v31 }
 0x2f0   :  { %1004 = vpow2.f32 %v318_v45  ;;  %323 = vadd.xlane.f32.xlu0 %v322_v49  ;;  %958 = vmatprep.subr.bf16.mxu0 %v957_v34 }
 0x2f1   :  { %1006 = vpow2.f32 %v320_v46 }
 0x2f2   :  { %v997_v50 = vpop.eup %996 }
 0x2f3   :  { %v999_v51 = vpop.eup %998  ;;  %v328_v52 = vsel %vm273_vm2, %v997_v50, 0.0  ;;  %960 = vmatpush3.bf16.msra.mxu0 %v957_v34 }
 0x2f4   :  { %329 = vadd.xlane.f32.xlu0 %v328_v52  ;;  %v331_v53 = vsel %vm273_vm2, %v999_v51, 0.0 }
 0x2f5   :  { %332 = vadd.xlane.f32.xlu1 %v331_v53 }
 0x2f6   :  { %v1001_v54 = vpop.eup %1000 }
 0x2f7   :  { %v1003_v55 = vpop.eup %1002  ;;  %v334_v56 = vsel %vm273_vm2, %v1001_v54, 0.0 }
 0x2f8   :  { %335 = vadd.xlane.f32.xlu0 %v334_v56  ;;  %v337_v57 = vsel %vm273_vm2, %v1003_v55, 0.0 }
 0x2f9   :  { %338 = vadd.xlane.f32.xlu1 %v337_v57 }
 0x2fa   :  { %v1005_v58 = vpop.eup %1004 }
 0x2fb   :  { %v1007_v59 = vpop.eup %1006  ;;  %v340_v60 = vsel %vm273_vm2, %v1005_v58, 0.0 }
 0x2fc   :  { %341 = vadd.xlane.f32.xlu0 %v340_v60  ;;  %v343_v61 = vsel %vm273_vm2, %v1007_v59, 0.0 }
 0x2fd   :  { %344 = vadd.xlane.f32.xlu1 %v343_v61 }
 0x312   :  { %978 = vrot.lane.b32.xlu0 %v1111_v29, %s1030_s6 }
 0x37c   :  { %v327_v63 = vpop.xlane.xlu1 %326 }
 0x37d   :  { %v324_v62 = vpop.xlane.xlu0 %323 }
 0x37e   :  { %1008 = vrcp.f32 %v324_v62 }
 0x37f   :  { %1010 = vrcp.f32 %v327_v63 }
 0x381   :  { %v330_v0 = vpop.xlane.xlu0 %329 }
 0x382   :  { %v333_v1 = vpop.xlane.xlu1 %332  ;;  %1012 = vrcp.f32 %v330_v0 }
 0x383   :  { %1014 = vrcp.f32 %v333_v1 }
 0x385   :  { %v336_v2 = vpop.xlane.xlu0 %335 }
 0x386   :  { %v339_v6 = vpop.xlane.xlu1 %338  ;;  %1016 = vrcp.f32 %v336_v2 }
 0x387   :  { %1018 = vrcp.f32 %v339_v6 }
 0x388   :  { %v1009_v3 = vpop.eup %1008 }
 0x389   :  { %v342_v4 = vpop.xlane.xlu0 %341  ;;  %v354_v5 = vmul.f32 %v1009_v3, %v995_v42  ;;  %v1011_v12 = vpop.eup %1010 }
 0x38a   :  { %1020 = vrcp.f32 %v342_v4  ;;  %v345_v29 = vpop.xlane.xlu1 %344  ;;  %v355_v14 = vmul.f32 %v1011_v12, %v993_v41 }
 0x38b   :  { %877 = vmatprep.mubr.msk.f32.mxu1 %vm273_vm2, %v354_v5  ;;  %1022 = vrcp.f32 %v345_v29  ;;  %v987_v5 = vpack.i.bf16 %v115_v33, %v114_v32 }
 0x38c   :  { %v1013_v13 = vpop.eup %1012 }
 0x38d   :  { %v979_v7 = vpop.permute.xlu0 %978  ;;  %v1015_v15 = vpop.eup %1014  ;;  %v356_v16 = vmul.f32 %v1013_v13, %v997_v50  ;;  %988 = vrot.lane.b32.xlu0 %v987_v5, %s1028_s19 }
 0x38e   :  { %v981_v8 = vunpack.i.h.bf16 %v979_v7  ;;  %v980_v10 = vunpack.i.l.bf16 %v979_v7  ;;  %v357_v18 = vmul.f32 %v1015_v15, %v999_v51 }
 0x390   :  { %v949_v11 = vpack.c.bf16 %v981_v8, %v980_v10  ;;  %v1017_v17 = vpop.eup %1016 }
 0x391   :  { %v1019_v19 = vpop.eup %1018  ;;  %v358_v20 = vmul.f32 %v1017_v17, %v1001_v54 }
 0x392   :  { %950 = vmatprep.subr.bf16.mxu1 %v949_v11  ;;  %v359_v22 = vmul.f32 %v1019_v19, %v1003_v55 }
 0x393   :  { %952 = vmatpush3.bf16.msra.mxu1 %v949_v11 }
 0x394   :  { %v1021_v21 = vpop.eup %1020 }
 0x395   :  { %v1023_v23 = vpop.eup %1022  ;;  %v360_v24 = vmul.f32 %v1021_v21, %v1005_v58 }
 0x396   :  { %878 = vmatmul.mubr.msk.f32.vlgmr.msra.gmra.mrb[8].mxu1 %vm273_vm2, %v355_v14  ;;  %v361_v27 = vmul.f32 %v1023_v23, %v1007_v59  ;;  %v982_v14 = vpack.i.bf16 %v1203_v30, %v1198_v28 }
 0x397   :  { %880 = vmatprep.mubr.msk.f32.mxu1 %vm273_vm2, %v356_v16 }
 0x39a   :  { %881 = vmatmul.mubr.msk.f32.gmra.mrb[10].mxu1 %vm273_vm2, %v357_v18 }
 0x39b   :  { %883 = vmatprep.mubr.msk.f32.mxu1 %vm273_vm2, %v358_v20 }
 0x39e   :  { %884 = vmatmul.mubr.msk.f32.gmra.mrb[12].mxu1 %vm273_vm2, %v359_v22 }
 0x39f   :  { %886 = vmatprep.mubr.msk.f32.mxu1 %vm273_vm2, %v360_v24 }
 0x3a2   :  { %887 = vmatmul.mubr.msk.f32.gmra.mrb[14].mxu1 %vm273_vm2, %v361_v27 }
 0x3ff   :  { %v989_v19 = vpop.permute.xlu0 %988 }
 0x400   :  { %v991_v22 = vunpack.i.h.bf16 %v989_v19  ;;  %v990_v23 = vunpack.i.l.bf16 %v989_v19 }
 0x402   :  { %v965_v33 = vpack.c.bf16 %v991_v22, %v990_v23 }
 0x469   :  { %v879_v37 = vpop.f32.mrb[8].mxu1 }
 0x46a   :  { %v458_v38 = vpop.f32.mrb[9].mxu1  ;;  %v498_v42 = vmul.f32 %v879_v37, %v1124_v35 }
 0x46b   :  { %v497_v48 = vmul.f32 %v458_v38, %v1109_v26 }
 0x46d   :  { %v882_v41 = vpop.f32.mrb[10].mxu1 }
 0x46e   :  { %v500_v45 = vmul.f32 %v882_v41, %v1136_v39  ;;  %v468_v46 = vpop.f32.mrb[11].mxu1 }
 0x46f   :  { %v499_v49 = vmul.f32 %v468_v46, %v1129_v36  ;;  %v594_v36 = vlaneseq }
 0x470   :  { %v506_v50 = vadd.f32 %v500_v45, %v498_v42 }
 0x471   :  { %v505_v51 = vadd.f32 %v499_v49, %v497_v48  ;;  %v885_v52 = vpop.f32.mrb[12].mxu1  ;;  %v1223_v61 = vshrl.u32 %v594_v36, 7 }
 0x472   :  { %v502_v53 = vmul.f32 %v885_v52, %v1150_v43  ;;  %v478_v54 = vpop.f32.mrb[13].mxu1 }
 0x473   :  { %v501_v55 = vmul.f32 %v478_v54, %v1142_v40  ;;  %v596_v43 = vsub.s32 0, %v1223_v61  ;;  %v1229_v40 = vld [vmem:[%s1263_s1 + $0xe0] sm:$0xff]  ;;  %v629_v28 = vsub.s32 1, %v1223_v61  ;;  %v635_v38 = vsub.s32 2, %v1223_v61 }
 0x474   :  { %v508_v56 = vadd.f32 %v506_v50, %v502_v53 }
 0x475   :  { %v507_v57 = vadd.f32 %v505_v51, %v501_v55  ;;  %v888_v58 = vpop.f32.mrb[14].mxu1  ;;  %v597_v62 = vrot.slane %v1229_v40, %v596_v43  ;;  %v630_v37 = vrot.slane %v1229_v40, %v629_v28  ;;  %v636_v46 = vrot.slane %v1229_v40, %v635_v38 }
 0x476   :  { %v504_v35 = vmul.f32 %v888_v58, %v1164_v47  ;;  %v488_v59 = vpop.f32.mrb[15].mxu1  ;;  %v641_v51 = vsub.s32 3, %v1223_v61 }
 0x477   :  { %v503_v39 = vmul.f32 %v488_v59, %v1156_v44 }
 0x478   :  { %v510_v60 = vadd.f32 %v508_v56, %v504_v35  ;;  %v642_v52 = vrot.slane %v1229_v40, %v641_v51 }
 0x479   :  { %v509_v26 = vadd.f32 %v507_v57, %v503_v39 }
 0x47b   :  { %897 = vmatprep.mubr.msk.f32.mxu0 %vm139_vm0, %v509_v26 }
 0x47c   :  { %898 = vmatmul.mubr.msk.f32.vlgmr.msra.gmra.mrb[2].mxu0 %vm139_vm0, %v510_v60 }
 0x54f   :  { %v899_v47 = vpop.f32.mrb[2].mxu0 }
 0x550   :  { %v583_v44 = vpop.f32.mrb[3].mxu0  ;;  %v593_v63 = vadd.f32 %v899_v47, %v1103_v25 }
 0x551   :  { %v592_v0 = vadd.f32 %v583_v44, %v1067_v9 }
 0x552   :  { %v599_v2 = vadd.f32 %v597_v62, %v593_v63 }
 0x553   :  { %v1234_v1 = vadd.f32 %v597_v62, %v592_v0 }
 0x554   :  { %v603_v4 = vsel %vm139_vm0, %v599_v2, 0.0 }
 0x555   :  { %v600_v3 = vsel %vm139_vm0, %v1234_v1, 0.0 }
 0x556   :  { %601 = vadd.xlane.f32.xlu1 %v600_v3 }
 0x55a   :  { %604 = vadd.xlane.f32.xlu1 %v603_v4 }
 0x5e3   :  { %v602_v6 = vpop.xlane.xlu1 %601 }
 0x5e4   :  { %v607_v7 = vmul.f32 0.03125, %v602_v6 }
 0x5e6   :  { %v609_v25 = vsub.f32 %v1234_v1, %v607_v7 }
 0x5e7   :  { %v605_v8 = vpop.xlane.xlu1 %604 }
 0x5e8   :  { %v608_v10 = vmul.f32 0.03125, %v605_v8  ;;  %v611_v12 = vmul.f32 %v609_v25, %v609_v25 }
 0x5ea   :  { %v610_v9 = vsub.f32 %v599_v2, %v608_v10  ;;  %v613_v13 = vsel %vm139_vm0, %v611_v12, 0.0 }
 0x5ec   :  { %v612_v29 = vmul.f32 %v610_v9, %v610_v9 }
 0x5ee   :  { %v616_v11 = vsel %vm139_vm0, %v612_v29, 0.0 }
 0x5ef   :  { %617 = vadd.xlane.f32.xlu1 %v616_v11 }
 0x5f3   :  { %614 = vadd.xlane.f32.xlu1 %v613_v13 }
 0x604   :  { %983 = vrot.lane.b32.xlu1 %v982_v14, %s1028_s19 }
 0x67c   :  { %v618_v15 = vpop.xlane.xlu1 %617 }
 0x67d   :  { %v620_v16 = vmul.f32 0.03125, %v618_v15 }
 0x67f   :  { %v622_v17 = vadd.f32 1e-05, %v620_v16 }
 0x680   :  { %v615_v18 = vpop.xlane.xlu1 %614 }
 0x681   :  { %1024 = vrsqrt.f32 %v622_v17  ;;  %v619_v20 = vmul.f32 0.03125, %v615_v18 }
 0x683   :  { %v621_v21 = vadd.f32 1e-05, %v619_v20 }
 0x684   :  { %v984_v24 = vpop.permute.xlu1 %983 }
 0x685   :  { %1026 = vrsqrt.f32 %v621_v21  ;;  %v986_v27 = vunpack.i.h.bf16 %v984_v24  ;;  %v985_v31 = vunpack.i.l.bf16 %v984_v24 }
 0x687   :  { %v961_v32 = vpack.c.bf16 %v986_v27, %v985_v31 }
 0x689   :  { %962 = vmatprep.subr.bf16.mxu1 %v961_v32 }
 0x68a   :  { %964 = vmatpush3.bf16.msra.mxu1 %v961_v32 }
 0x68b   :  { %v1025_v30 = vpop.eup %1024  ;;  %966 = vmatprep.subr.bf16.mxu1 %v965_v33 }
 0x68c   :  { %v626_v34 = vmul.f32 %v1025_v30, %v610_v9 }
 0x68e   :  { %968 = vmatpush3.bf16.msra.mxu1 %v965_v33  ;;  %v632_v45 = vmul.f32 %v630_v37, %v626_v34 }
 0x68f   :  { %v1027_v41 = vpop.eup %1026 }
 0x690   :  { %v625_v42 = vmul.f32 %v1027_v41, %v609_v25  ;;  %v638_v50 = vadd.f32 %v636_v46, %v632_v45 }
 0x692   :  { %v631_v48 = vmul.f32 %v630_v37, %v625_v42 }
 0x694   :  { %v637_v49 = vadd.f32 %v636_v46, %v631_v48 }
 0x696   :  { %908 = vmatprep.mubr.msk.f32.mxu1 %vm139_vm0, %v637_v49 }
 0x697   :  { %909 = vmatmul.mubr.msk.f32.vlgmr.msra.gmra.mrb[16].mxu1 %vm139_vm0, %v638_v50 }
 0x76a   :  { %v910_v53 = vpop.f32.mrb[16].mxu1 }
 0x76b   :  { %v737_v54 = vadd.f32 %v910_v53, %v642_v52  ;;  %v731_v55 = vpop.f32.mrb[17].mxu1 }
 0x76c   :  { %v732_v56 = vadd.f32 %v731_v55, %v642_v52 }
 0x76d   :  { %v741_v57 = vadd.f32 %v737_v54, %v599_v2 }
 0x76e   :  { %v740_v58 = vadd.f32 %v732_v56, %v1234_v1 }
 0x76f   :  { %v743_v35 = vsel %vm139_vm0, %v741_v57, 0.0 }
 0x770   :  { %745 = vst [vmem:[%s1265_s2 + $0x8] sm:$0xff] %v743_v35  ;;  %v742_v59 = vsel %vm139_vm0, %v740_v58, 0.0 }
 0x771   :  { %744 = vst [vmem:[%s1265_s2] sm:$0xff] %v742_v59 }

</bundles_post_ra>
